<compile_context>
chip_gen: v7x
topology: tpu7x:2x2x1
jax: 0.10.0
libtpu: 0.0.40
codegen_flags: <defaults>
</compile_context>

<pallas_src>
import functools

import jax
import jax.numpy as jnp
from jax.experimental import pallas as pl
from jax.experimental.pallas import tpu as pltpu


# --------------------------------------------------------------------------- #
# Kernel
# --------------------------------------------------------------------------- #
def _loss_kernel(face_ref, audio_ref, out_ref, *, mm_dtype, exp_dtype):
    """One grid step = one (instance chunk, face-row stripe).

    face_ref  : (TG, TR, D) VMEM block (face rows of this stripe)
    audio_ref : (TG, B,  D) VMEM block (full audio block, resident across r)
    out_ref   : (1, 1, TG, TR) per-row losses  lse_i - logits[i, i]
    """
    eps2 = 1e-24          # (F.normalize eps = 1e-12) ** 2
    dist2_floor = 1e-12   # keeps rsqrt finite for coincident rows (PyTorch: inf)
    tr = face_ref.shape[1]

    f = face_ref[...]                                   # native dtype
    a = audio_ref[...]                                  # native dtype

    # L2 normalization: x / max(||x||, eps) == x * rsqrt(max(sum(x*x), eps^2)),
    # computed in f32; matmul operands cast to mm_dtype (bf16 for bf16 inputs).
    f32 = f.astype(jnp.float32)
    a32 = a.astype(jnp.float32)
    f_scale = jax.lax.rsqrt(
        jnp.maximum(jnp.sum(f32 * f32, axis=2, keepdims=True), eps2))
    a_scale = jax.lax.rsqrt(
        jnp.maximum(jnp.sum(a32 * a32, axis=2, keepdims=True), eps2))
    f_n = (f32 * f_scale).astype(mm_dtype)              # (TG, TR, D) unit rows
    # Fold the -2 of dist2 = 2 - 2*<f, a> into the audio scale: one B*D pass
    # instead of an extra TR*B panel pass after the matmul.
    a_s = (a32 * (-2.0 * a_scale)).astype(mm_dtype)     # (TG, B, D)

    # gram_s[g, i, j] = -2 * <f_n[g, i], a_n[g, j]>   (batched MXU matmul)
    gram_s = jax.lax.dot_general(
        f_n, a_s,
        dimension_numbers=(((2,), (2,)), ((0,), (0,))),
        preferred_element_type=jnp.float32)             # (TG, TR, B)

    # Unit-norm rows:  dist2 = 2 + gram_s ;  logits = 1/dist = rsqrt(dist2).
    logits = jax.lax.rsqrt(jnp.maximum(2.0 + gram_s, dist2_floor))

    # Diagonal logits for this stripe: audio rows [r*TR, r*TR+TR) taken from
    # the resident audio block and renormalized with identical math (so the
    # mm_dtype values match the panel operands bit-for-bit); f32 accumulation.
    r = pl.program_id(1)
    start = pl.multiple_of(r * tr, tr)
    ad32 = audio_ref[:, pl.ds(start, tr), :].astype(jnp.float32)
    ad_scale = jax.lax.rsqrt(
        jnp.maximum(jnp.sum(ad32 * ad32, axis=2, keepdims=True), eps2))
    ad_s = (ad32 * (-2.0 * ad_scale)).astype(mm_dtype)
    diag_dot = jnp.sum(
        f_n.astype(jnp.float32) * ad_s.astype(jnp.float32), axis=2)  # (TG, TR)
    diag_logit = jax.lax.rsqrt(jnp.maximum(2.0 + diag_dot, dist2_floor))

    # Row-wise log-sum-exp (cross entropy with label = row index).  exp runs
    # in bf16 on chips with a bf16 EUP (args are <= 0), f32 accumulation.
    m = jnp.max(logits, axis=2, keepdims=True)                        # (TG,TR,1)
    e = jnp.exp((logits - m).astype(exp_dtype)).astype(jnp.float32)
    lse = m[..., 0] + jnp.log(jnp.sum(e, axis=2))                     # (TG, TR)

    # Per-row losses; the mean over rows / row-tiles happens in the wrapper.
    out_ref[...] = (lse - diag_logit)[None, None, :, :]


# --------------------------------------------------------------------------- #
# Tile / generation heuristics
# --------------------------------------------------------------------------- #
def _device_kind():
    try:
        return jax.devices()[0].device_kind.lower()
    except Exception:
        return ""


def _vmem_budget():
    """(working-set budget, scoped vmem limit) in bytes, per generation."""
    kind = _device_kind()
    if ("v5" in kind) or ("v6" in kind):
        # 128 MiB physical VMEM; default scoped limit (16/32 MiB) is too low.
        return 72 * 1024 * 1024, 96 * 1024 * 1024
    # v7x (64 MiB physical) or unknown: conservative.
    return 36 * 1024 * 1024, 48 * 1024 * 1024


def _has_bf16_eup():
    kind = _device_kind()
    return ("v6" in kind) or ("v7" in kind) or ("tpu7" in kind)


def _pick_tiles(G, B, D, in_itemsize, mm_itemsize, budget_bytes):
    """Choose (instances per step TG, face-row tile TR) under a VMEM budget."""

    def footprint(tg, tr):
        in_bytes = 2 * tg * D * (tr + B) * in_itemsize        # double-buffered inputs
        norm_bytes = tg * D * (tr + B) * (4 + mm_itemsize)    # f32 temps + mm operands
        panel_bytes = 3 * tg * tr * B * 4                     # gram / logits / exp temps
        out_bytes = 2 * tg * tr * 4
        return in_bytes + norm_bytes + panel_bytes + out_bytes

    # Row tiles: multiples of 8 dividing B, or B itself (full block).
    tr_cands = sorted({t for t in ([B] + list(range(8, B + 1, 8))) if B % t == 0},
                      reverse=True)
    tr = next((t for t in tr_cands if footprint(1, t) <= budget_bytes),
              tr_cands[-1])
    tg_cands = sorted((d for d in range(1, G + 1) if G % d == 0), reverse=True)
    tg = next((d for d in tg_cands if footprint(d, tr) <= budget_bytes), 1)
    return tg, tr


# --------------------------------------------------------------------------- #
# Wrappers
# --------------------------------------------------------------------------- #
def softmax_contrastive_loss_batched(face_feats, audio_feats, *,
                                     instances_per_step=None, row_tile=None,
                                     matmul_dtype=None, exp_in_bf16=None):
    """G independent SoftmaxContrastiveLoss values in one pallas_call.

    face_feats, audio_feats : (G, B, D)   ->   (G,) float32 losses
    """
    G, B, D = face_feats.shape
    assert audio_feats.shape == (G, B, D)

    if matmul_dtype is None:
        # Follow the input dtype: bf16 inputs use the bf16 MXU path; f32 inputs
        # are not silently downcast.
        if face_feats.dtype == jnp.bfloat16 and audio_feats.dtype == jnp.bfloat16:
            matmul_dtype = jnp.bfloat16
        else:
            matmul_dtype = jnp.float32
    if exp_in_bf16 is None:
        exp_in_bf16 = (matmul_dtype == jnp.bfloat16) and _has_bf16_eup()
    exp_dtype = jnp.bfloat16 if exp_in_bf16 else jnp.float32

    budget, vmem_limit = _vmem_budget()
    tg, tr = _pick_tiles(G, B, D,
                         jnp.dtype(face_feats.dtype).itemsize,
                         jnp.dtype(matmul_dtype).itemsize,
                         budget)
    if instances_per_step is not None:
        tg = instances_per_step
    if row_tile is not None:
        tr = row_tile
    assert G % tg == 0, (G, tg)
    assert B % tr == 0 and (tr == B or tr % 8 == 0), (B, tr)

    num_steps = G // tg
    n_row_tiles = B // tr

    kernel = functools.partial(_loss_kernel,
                               mm_dtype=matmul_dtype, exp_dtype=exp_dtype)

    per_row = pl.pallas_call(
        kernel,
        out_shape=jax.ShapeDtypeStruct((num_steps, n_row_tiles, tg, tr),
                                       jnp.float32),
        grid_spec=pltpu.PrefetchScalarGridSpec(
            num_scalar_prefetch=0,
            grid=(num_steps, n_row_tiles),
            in_specs=[
                # Face: one row stripe per step.
                pl.BlockSpec((tg, tr, D), lambda g, r: (g, r, 0)),
                # Audio: full block, index_map ignores r -> resident across the
                # row-tile axis (fetched once per instance chunk).
                pl.BlockSpec((tg, B, D), lambda g, r: (g, 0, 0)),
            ],
            out_specs=pl.BlockSpec((1, 1, tg, tr), lambda g, r: (g, r, 0, 0)),
        ),
        compiler_params=pltpu.CompilerParams(
            dimension_semantics=("parallel", "parallel"),
            vmem_limit_bytes=vmem_limit),
    )(face_feats, audio_feats)

    # (steps, row_tiles, TG, TR) -> (G, B) per-row losses -> per-instance mean.
    per_row = per_row.transpose(0, 2, 1, 3).reshape(G, B)
    return jnp.mean(per_row, axis=1)


def softmax_contrastive_loss(face_feat, audio_feat, **kwargs):
    """Module-faithful API: single (B, D) face / audio pair -> scalar loss."""
    return softmax_contrastive_loss_batched(face_feat[None], audio_feat[None],
                                            **kwargs)[0]


# --------------------------------------------------------------------------- #
# Reference + tests
# --------------------------------------------------------------------------- #
def _reference_loss(f, a):
    """Pure-JAX mirror of the PyTorch forward (mode='max'), in f32."""
    f = f.astype(jnp.float32)
    a = a.astype(jnp.float32)
    fn = f / jnp.maximum(jnp.linalg.norm(f, axis=1, keepdims=True), 1e-12)
    an = a / jnp.maximum(jnp.linalg.norm(a, axis=1, keepdims=True), 1e-12)
    dist = jnp.linalg.norm(fn[:, None, :] - an[None, :, :], axis=2)
    logits = 1.0 / dist
    lse = jax.scipy.special.logsumexp(logits, axis=1)
    return jnp.mean(lse - jnp.diag(logits))


if __name__ == "__main__":
    key = jax.random.PRNGKey(0)
    k1, k2, k3, k4, k5, k6 = jax.random.split(key, 6)

    # 1) Single (B, D) pair -- matches the nn.Module forward signature.
    B, D = 8, 32
    face = jax.random.normal(k1, (B, D), dtype=jnp.float32)
    audio = jax.random.normal(k2, (B, D), dtype=jnp.float32)
    loss = softmax_contrastive_loss(face, audio)
    jax.block_until_ready(loss)
    ref = _reference_loss(face, audio)
    assert jnp.allclose(loss, ref, atol=1e-4, rtol=1e-4), (loss, ref)

    # 2) Batched: 16 independent loss instances in one pallas_call.
    G = 16
    faces = jax.random.normal(k3, (G, B, D), dtype=jnp.float32)
    audios = jax.random.normal(k4, (G, B, D), dtype=jnp.float32)
    losses = softmax_contrastive_loss_batched(faces, audios)
    jax.block_until_ready(losses)
    refs = jax.vmap(_reference_loss)(faces, audios)
    assert jnp.allclose(losses, refs, atol=1e-4, rtol=1e-4), (losses, refs)

    # 3) Row-tiled path: grid = (2 instances, 4 row tiles), resident audio.
    G2, B2, D2 = 2, 32, 128
    faces2 = jax.random.normal(k5, (G2, B2, D2), dtype=jnp.float32)
    audios2 = jax.random.normal(k6, (G2, B2, D2), dtype=jnp.float32)
    losses2 = softmax_contrastive_loss_batched(faces2, audios2,
                                               instances_per_step=1, row_tile=8)
    jax.block_until_ready(losses2)
    refs2 = jax.vmap(_reference_loss)(faces2, audios2)
    assert jnp.allclose(losses2, refs2, atol=1e-4, rtol=1e-4), (losses2, refs2)

    # 4) bf16 inputs: bf16 MXU operands (+ bf16 exp on v6e/v7x); looser tol.
    faces_bf = faces2.astype(jnp.bfloat16)
    audios_bf = audios2.astype(jnp.bfloat16)
    losses_bf = softmax_contrastive_loss_batched(faces_bf, audios_bf,
                                                 instances_per_step=1,
                                                 row_tile=16)
    jax.block_until_ready(losses_bf)
    refs_bf = jax.vmap(_reference_loss)(faces_bf, audios_bf)
    assert jnp.allclose(losses_bf, refs_bf, atol=5e-2, rtol=5e-2), (losses_bf,
                                                                    refs_bf)

    print("KERNEL_OK")
</pallas_src>

<mosaic_0001>
module attributes {stable_mosaic.version = 11 : i64} {
  func.func @_loss_kernel(%arg0: i32, %arg1: i32, %arg2: memref<1x8x32xf32, #tpu.memory_space<vmem>>, %arg3: memref<1x8x32xf32, #tpu.memory_space<vmem>>, %arg4: memref<1x1x1x8xf32, #tpu.memory_space<vmem>>) attributes {dimension_semantics = [#tpu.dimension_semantics<parallel>, #tpu.dimension_semantics<parallel>], iteration_bounds = array<i64: 1, 1>, scalar_prefetch = 0 : i64, scratch_operands = 0 : i64, tpu.core_type = #tpu.core_type<tc>, window_params = [{transform_indices = @transform_0, window_bounds = array<i64: 1, 8, 32>}, {transform_indices = @transform_1, window_bounds = array<i64: 1, 8, 32>}, {transform_indices = @transform_2, window_bounds = array<i64: 1, 1, 1, 8>}]} {
    %c0 = arith.constant 0 : index
    %c0_0 = arith.constant 0 : index
    %c0_1 = arith.constant 0 : index
    %0 = vector.load %arg2[%c0, %c0_0, %c0_1] : memref<1x8x32xf32, #tpu.memory_space<vmem>>, vector<1x8x32xf32>
    %c0_2 = arith.constant 0 : index
    %c0_3 = arith.constant 0 : index
    %c0_4 = arith.constant 0 : index
    %1 = vector.load %arg3[%c0_2, %c0_3, %c0_4] : memref<1x8x32xf32, #tpu.memory_space<vmem>>, vector<1x8x32xf32>
    %2 = arith.mulf %0, %0 : vector<1x8x32xf32>
    %cst = arith.constant dense<0.000000e+00> : vector<1x8xf32>
    %3 = vector.multi_reduction <add>, %2, %cst [2] : vector<1x8x32xf32> to vector<1x8xf32>
    %4 = vector.shape_cast %3 : vector<1x8xf32> to vector<1x8x1xf32>
    %cst_5 = arith.constant 1.000000e-24 : f32
    %5 = vector.broadcast %cst_5 : f32 to vector<1x8x1xf32>
    %6 = arith.maximumf %4, %5 : vector<1x8x1xf32>
    %7 = math.rsqrt %6 : vector<1x8x1xf32>
    %8 = arith.mulf %1, %1 : vector<1x8x32xf32>
    %cst_6 = arith.constant dense<0.000000e+00> : vector<1x8xf32>
    %9 = vector.multi_reduction <add>, %8, %cst_6 [2] : vector<1x8x32xf32> to vector<1x8xf32>
    %10 = vector.shape_cast %9 : vector<1x8xf32> to vector<1x8x1xf32>
    %cst_7 = arith.constant 1.000000e-24 : f32
    %11 = vector.broadcast %cst_7 : f32 to vector<1x8x1xf32>
    %12 = arith.maximumf %10, %11 : vector<1x8x1xf32>
    %13 = math.rsqrt %12 : vector<1x8x1xf32>
    %14 = vector.broadcast %7 : vector<1x8x1xf32> to vector<1x8x32xf32>
    %15 = arith.mulf %0, %14 : vector<1x8x32xf32>
    %cst_8 = arith.constant -2.000000e+00 : f32
    %16 = vector.broadcast %cst_8 : f32 to vector<1x8x1xf32>
    %17 = arith.mulf %16, %13 : vector<1x8x1xf32>
    %18 = vector.broadcast %17 : vector<1x8x1xf32> to vector<1x8x32xf32>
    %19 = arith.mulf %1, %18 : vector<1x8x32xf32>
    %cst_9 = arith.constant dense<0.000000e+00> : vector<1x8x8xf32>
    %20 = tpu.matmul %15, %19, %cst_9 {dimension_numbers = #tpu.dot_dimension_numbers<[2], [2], [1], [1], [0, 0, 0, 1, 1, 1], [0], [0]>} : vector<1x8x32xf32>, vector<1x8x32xf32>, vector<1x8x8xf32> -> vector<1x8x8xf32>
    %cst_10 = arith.constant 2.000000e+00 : f32
    %21 = vector.broadcast %cst_10 : f32 to vector<1x8x8xf32>
    %22 = arith.addf %21, %20 : vector<1x8x8xf32>
    %cst_11 = arith.constant 9.99999996E-13 : f32
    %23 = vector.broadcast %cst_11 : f32 to vector<1x8x8xf32>
    %24 = arith.maximumf %22, %23 : vector<1x8x8xf32>
    %25 = math.rsqrt %24 : vector<1x8x8xf32>
    %c8_i32 = arith.constant 8 : i32
    %26 = arith.muli %arg1, %c8_i32 : i32
    %27 = tpu.assume_multiple %26, 8 : i32
    %c0_12 = arith.constant 0 : index
    %28 = arith.index_cast %27 : i32 to index
    %c0_13 = arith.constant 0 : index
    %29 = vector.load %arg3[%c0_12, %28, %c0_13] : memref<1x8x32xf32, #tpu.memory_space<vmem>>, vector<1x8x32xf32>
    %30 = arith.mulf %29, %29 : vector<1x8x32xf32>
    %cst_14 = arith.constant dense<0.000000e+00> : vector<1x8xf32>
    %31 = vector.multi_reduction <add>, %30, %cst_14 [2] : vector<1x8x32xf32> to vector<1x8xf32>
    %32 = vector.shape_cast %31 : vector<1x8xf32> to vector<1x8x1xf32>
    %cst_15 = arith.constant 1.000000e-24 : f32
    %33 = vector.broadcast %cst_15 : f32 to vector<1x8x1xf32>
    %34 = arith.maximumf %32, %33 : vector<1x8x1xf32>
    %35 = math.rsqrt %34 : vector<1x8x1xf32>
    %cst_16 = arith.constant -2.000000e+00 : f32
    %36 = vector.broadcast %cst_16 : f32 to vector<1x8x1xf32>
    %37 = arith.mulf %36, %35 : vector<1x8x1xf32>
    %38 = vector.broadcast %37 : vector<1x8x1xf32> to vector<1x8x32xf32>
    %39 = arith.mulf %29, %38 : vector<1x8x32xf32>
    %40 = arith.mulf %15, %39 : vector<1x8x32xf32>
    %cst_17 = arith.constant dense<0.000000e+00> : vector<1x8xf32>
    %41 = vector.multi_reduction <add>, %40, %cst_17 [2] : vector<1x8x32xf32> to vector<1x8xf32>
    %cst_18 = arith.constant 2.000000e+00 : f32
    %42 = vector.broadcast %cst_18 : f32 to vector<1x8xf32>
    %43 = arith.addf %42, %41 : vector<1x8xf32>
    %cst_19 = arith.constant 9.99999996E-13 : f32
    %44 = vector.broadcast %cst_19 : f32 to vector<1x8xf32>
    %45 = arith.maximumf %43, %44 : vector<1x8xf32>
    %46 = math.rsqrt %45 : vector<1x8xf32>
    %cst_20 = arith.constant dense<0xFF800000> : vector<1x8xf32>
    %47 = vector.multi_reduction <maximumf>, %25, %cst_20 [2] : vector<1x8x8xf32> to vector<1x8xf32>
    %48 = vector.shape_cast %47 : vector<1x8xf32> to vector<1x8x1xf32>
    %49 = vector.broadcast %48 : vector<1x8x1xf32> to vector<1x8x8xf32>
    %50 = arith.subf %25, %49 : vector<1x8x8xf32>
    %51 = math.exp %50 : vector<1x8x8xf32>
    %52 = vector.shape_cast %48 : vector<1x8x1xf32> to vector<1x8xf32>
    %cst_21 = arith.constant dense<0.000000e+00> : vector<1x8xf32>
    %53 = vector.multi_reduction <add>, %51, %cst_21 [2] : vector<1x8x8xf32> to vector<1x8xf32>
    %54 = math.log %53 : vector<1x8xf32>
    %55 = arith.addf %52, %54 : vector<1x8xf32>
    %56 = arith.subf %55, %46 : vector<1x8xf32>
    %57 = vector.shape_cast %56 : vector<1x8xf32> to vector<1x1x1x8xf32>
    %c0_22 = arith.constant 0 : index
    %c0_23 = arith.constant 0 : index
    %c0_24 = arith.constant 0 : index
    %c0_25 = arith.constant 0 : index
    %58 = vector.load %arg4[%c0_22, %c0_23, %c0_24, %c0_25] : memref<1x1x1x8xf32, #tpu.memory_space<vmem>>, vector<1x1x1x8xf32>
    tpu.vector_store %arg4[%c0_22, %c0_23, %c0_24, %c0_25], %57 {strides = array<i32>} : memref<1x1x1x8xf32, #tpu.memory_space<vmem>>, vector<1x1x1x8xf32>,
    return
  }
  func.func @transform_0(%arg0: i32, %arg1: i32) -> (i32, i32, i32) {
    %c0_i32 = arith.constant 0 : i32
    %c0_i32_0 = arith.constant 0 : i32
    return %arg0, %arg1, %c0_i32 : i32, i32, i32
  }
  func.func @transform_1(%arg0: i32, %arg1: i32) -> (i32, i32, i32) {
    %c0_i32 = arith.constant 0 : i32
    %c0_i32_0 = arith.constant 0 : i32
    %c0_i32_1 = arith.constant 0 : i32
    return %arg0, %c0_i32, %c0_i32_0 : i32, i32, i32
  }
  func.func @transform_2(%arg0: i32, %arg1: i32) -> (i32, i32, i32, i32) {
    %c0_i32 = arith.constant 0 : i32
    %c0_i32_0 = arith.constant 0 : i32
    %c0_i32_1 = arith.constant 0 : i32
    return %arg0, %arg1, %c0_i32, %c0_i32_0 : i32, i32, i32, i32
  }
}

</mosaic_0001>

<bundles_post_ra>
// kernel: tpu_custom_call.1
= control target key start
LH: loop header
LB: loop body
LE: loop exit
PB: predicated region body
PF: predicated region fallthrough
CT: control target
= control target key end

     0   :  { %7 = vsyncpa [#allocation3], 0  ;;  %s351_s0 = inlined_call_operand.hbm [shape: f32[1,8,32], index: 0, kind: input, shape index: {}]   ;;  %s352_s1 = inlined_call_operand.hbm [shape: f32[1,8,32], index: 1, kind: input, shape index: {}]   ;;  %s353_s2 = inlined_call_operand.hbm [shape: f32[1,1,1,8], index: 2, kind: output, shape index: {}]  }
   0x1   :  { %8 = vsyncpa [#allocation6], 0 }
   0x2   :  { %9 = vsyncpa [#allocation4], 0  ;;  %s290_s9 = smov [#allocation2]   ;;  %s291_s11 = smov [#allocation5]  }
   0x3   :  { %s16_s10 = sshll.u32 %s290_s9, 4  ;;  %s26_s12 = sshll.u32 %s291_s11, 4  ;;  %s17_s10 = int_to_ptr.vmem [resolvable:$true] %s16_s10  ;;  %s27_s12 = int_to_ptr.vmem [resolvable:$true] %s26_s12 }
   0x4   :  { %s218_s15 = scalar_lea.hbm %s351_s0, 128 }
   0x5   :  { %p219_p0 = scmp.ne.s32.totalorder %s351_s0, %s218_s15  ;;  %p222_p1 = scmp.lt.u32.totalorder %s218_s15, %s351_s0 }
   0x7   :  { %p224_p2 = pnand %p222_p1, %p219_p0 }
   0x9   :  { %227 = shalt.err (!%p224_p2)
}
   0xa   :  { %s228_s20 = scalar_lea.vmem %s17_s10, 128  ;;  %p233_p4 = scmp.lt.s32.totalorder %s17_s10, %s17_s10 }
   0xb   :  { %p229_p3 = scmp.ne.s32.totalorder %s17_s10, %s228_s20  ;;  %p234_p5 = scmp.lt.s32.totalorder %s228_s20, %s228_s20 }
   0xd   :  { %p235_p6 = por %p234_p5, %p233_p4 }
   0xf   :  { %p236_p7 = pnand %p235_p6, %p229_p3 }
  0x11   :  { %239 = shalt.err (!%p236_p7)
}
  0x12   :  { %19 = dma.hbm_to_vmem [thread:$0]  %s351_s0, 128, %s17_s10, [#allocation3]  }
  0x13   :  { %s240_s25 = scalar_lea.hbm %s352_s1, 128 }
  0x14   :  { %p241_p8 = scmp.ne.s32.totalorder %s352_s1, %s240_s25  ;;  %p244_p9 = scmp.lt.u32.totalorder %s240_s25, %s352_s1 }
  0x16   :  { %p246_p10 = pnand %p244_p9, %p241_p8 }
  0x18   :  { %249 = shalt.err (!%p246_p10)
}
  0x19   :  { %s250_s30 = scalar_lea.vmem %s27_s12, 128  ;;  %p255_p12 = scmp.lt.s32.totalorder %s27_s12, %s27_s12 }
  0x1a   :  { %p251_p11 = scmp.ne.s32.totalorder %s27_s12, %s250_s30  ;;  %p256_p13 = scmp.lt.s32.totalorder %s250_s30, %s250_s30 }
  0x1c   :  { %p257_p0 = por %p256_p13, %p255_p12 }
  0x1e   :  { %p258_p1 = pnand %p257_p0, %p251_p11 }
  0x20   :  { %261 = shalt.err (!%p258_p1)
}
  0x21   :  { %29 = dma.hbm_to_vmem [thread:$0]  %s352_s1, 128, %s27_s12, [#allocation6]  }
  0x22   :  { %284 = dma.done.wait [#allocation3], 128  }
  0x23   :  { %285 = vsyncadd [#allocation3], 4294967168 }
  0x24   :  { %286 = dma.done.wait [#allocation6], 128  }
  0x25   :  { %287 = vsyncadd [#allocation6], 4294967168  ;;  %v37_v0 = vld [vmem:[#allocation5] sm:$0xff]  ;;  %vm39_vm0 = vcmask 261120   ;;  %v36_v1 = vld [vmem:[#allocation2] sm:$0xff]  ;;  %v292_v6 = vmov 0.0   ;;  %v165_v38 = vlaneseq }
  0x26   :  { %v45_v2 = vmul.f32 %v37_v0, %v37_v0  ;;  %v38_v3 = vmul.f32 %v36_v1, %v36_v1  ;;  %194 = vmatprep.subr.mxu0 %v292_v6  ;;  %vm293_vm1 = vmmov 0   ;;  %vm150_vm2 = vcmask 64512   ;;  %s294_s1 = smov [#allocation7]  }
  0x27   :  { %196 = vmatprep.mubr.msk.f32.mxu0 %vm293_vm1, %v292_v6  ;;  %v166_v39 = vand.u32 127, %v165_v38  ;;  %v168_v40 = vshrl.u32 %v165_v38, 7  ;;  %s180_s4 = sshll.u32 %s294_s1, 4  ;;  %vm172_vm3 = vcmask 57344   ;;  %s181_s4 = int_to_ptr.vmem [resolvable:$true] %s180_s4 }
  0x28   :  { %v46_v4 = vsel %vm39_vm0, %v45_v2, 0.0  ;;  %v40_v5 = vsel %vm39_vm0, %v38_v3, 0.0  ;;  %s262_s5 = scalar_lea.vmem %s181_s4, 16  ;;  %s266_s6 = scalar_lea.vmem %s181_s4, 32 }
  0x29   :  { %47 = vadd.xlane.f32.xlu0 %v46_v4  ;;  %137 = vadd.xlane.f32.xlu1 %v46_v4  ;;  %v169_v44 = vsub.s32 %v166_v39, %v168_v40  ;;  %p263_p2 = scmp.ne.s32.totalorder %s181_s4, %s262_s5  ;;  %p267_p3 = scmp.lt.s32.totalorder %s181_s4, %s181_s4 }
  0x2a   :  { %p268_p4 = scmp.lt.s32.totalorder %s266_s6, %s262_s5 }
  0x2c   :  { %p269_p5 = por %p268_p4, %p267_p3 }
  0x2d   :  { %41 = vadd.xlane.f32.xlu0 %v40_v5 }
  0x2e   :  { %p270_p6 = pnand %p269_p5, %p263_p2 }
  0xb6   :  { %v48_v7 = vpop.xlane.xlu0 %47  ;;  %v138_v8 = vpop.xlane.xlu1 %137 }
  0xb7   :  { %v49_v9 = vmax.f32 %v48_v7, 1e-24  ;;  %v139_v10 = vmax.f32 %v138_v8, 1e-24 }
  0xb9   :  { %204 = vrsqrt.f32 %v49_v9 }
  0xba   :  { %206 = vrsqrt.f32 %v139_v10  ;;  %v42_v11 = vpop.xlane.xlu0 %41 }
  0xbb   :  { %v43_v12 = vmax.f32 %v42_v11, 1e-24 }
  0xbd   :  { %208 = vrsqrt.f32 %v43_v12 }
  0xc3   :  { %v205_v13 = vpop.eup %204 }
  0xc4   :  { %v207_v14 = vpop.eup %206  ;;  %v52_v15 = vmul.f32 -2.0, %v205_v13 }
  0xc5   :  { %v141_v16 = vmul.f32 -2.0, %v207_v14 }
  0xc6   :  { %v53_v17 = vmul.f32 %v52_v15, %v37_v0 }
  0xc7   :  { %v209_v18 = vpop.eup %208  ;;  %v142_v19 = vmul.f32 %v141_v16, %v37_v0 }
  0xc8   :  { %195 = vmatpush3.xpose.msk.msra.mxu0 %vm39_vm0, %v53_v17  ;;  %v51_v20 = vmul.f32 %v209_v18, %v36_v1 }
  0xca   :  { %v143_v21 = vmul.f32 %v142_v19, %v51_v20 }
  0xcb   :  { %197 = vmatmul.mubr.msk.f32.vlgmr.msra.gmra.mrb[0].mxu0 %vm39_vm0, %v51_v20 }
  0xcc   :  { %v144_v22 = vsel %vm39_vm0, %v143_v21, 0.0 }
  0xcd   :  { %145 = vadd.xlane.f32.xlu0 %v144_v22 }
 0x15a   :  { %v146_v34 = vpop.xlane.xlu0 %145 }
 0x15b   :  { %v147_v35 = vadd.f32 2.0, %v146_v34 }
 0x15d   :  { %v148_v37 = vmax.f32 %v147_v35, 1e-12 }
 0x19e   :  { %v126_v23 = vpop.f32.mrb[0].mxu0 }
 0x19f   :  { %v127_v24 = vadd.f32 2.0, %v126_v23  ;;  %v198_v25 = vpop.f32.mrb[1].mxu0 }
 0x1a1   :  { %v130_v26 = vmax.f32 %v127_v24, 1e-12 }
 0x1a3   :  { %210 = vrsqrt.f32 %v130_v26 }
 0x1ad   :  { %v211_v27 = vpop.eup %210 }
 0x1ae   :  { %v151_v28 = vsel %vm150_vm2, %v211_v27, -inf }
 0x1af   :  { %152 = vmax.xlane.f32.xlu1 %v151_v28 }
 0x23c   :  { %v153_v29 = vpop.xlane.xlu1 %152 }
 0x23d   :  { %v154_v30 = vsub.f32 %v211_v27, %v153_v29 }
 0x23f   :  { %v155_v31 = vmul.f32 1.442695, %v154_v30 }
 0x241   :  { %212 = vpow2.f32 %v155_v31 }
 0x24b   :  { %v213_v32 = vpop.eup %212 }
 0x24c   :  { %v157_v33 = vsel %vm150_vm2, %v213_v32, 0.0 }
 0x24d   :  { %158 = vadd.xlane.f32.xlu1 %v157_v33 }
 0x2da   :  { %v159_v36 = vpop.xlane.xlu1 %158 }
 0x2db   :  { %214 = vlog2.f32 %v159_v36 }
 0x2dc   :  { %216 = vrsqrt.f32 %v148_v37 }
 0x2e5   :  { %v215_v41 = vpop.eup %214 }
 0x2e6   :  { %v161_v42 = vmul.f32 0.6931472, %v215_v41  ;;  %v217_v45 = vpop.eup %216 }
 0x2e8   :  { %v162_v43 = vadd.f32 %v161_v42, %v153_v29 }
 0x2ea   :  { %v163_v46 = vsub.f32 %v162_v43, %v217_v45 }
 0x2ec   :  { %v170_v47 = vrot.slane %v163_v46, %v169_v44 }
 0x2ee   :  { %173 = vst.msk [vmem:[#allocation7] sm:$0x1] %vm172_vm3, %v170_v47 }
 0x2ef   :  { %273 = shalt.err (!%p270_p6)
}
 0x2f0   :  { %s274_s9 = scalar_lea.hbm %s353_s2, 16 }
 0x2f1   :  { %p275_p7 = scmp.ne.s32.totalorder %s353_s2, %s274_s9  ;;  %p278_p8 = scmp.lt.u32.totalorder %s274_s9, %s353_s2 }
 0x2f3   :  { %p280_p9 = pnand %p278_p8, %p275_p7 }
 0x2f5   :  { %283 = shalt.err (!%p280_p9)
}
 0x2f6   :  { %183 = dma.vmem_to_hbm [thread:$0]  %s181_s4, 16, %s353_s2, [#allocation4]  }
 0x2f7   :  { %288 = dma.done.wait [#allocation4], 16  }
 0x2f8   :  { %289 = vsyncadd [#allocation4], 4294967280 }
 0x2f9   :  { %187 = vsyncpa [#allocation3], 1 }
 0x2fa   :  { %188 = vsyncpa [#allocation6], 1 }
 0x2fb   :  { %189 = vsyncpa [#allocation4], 1 }

</bundles_post_ra>
